<compile_context>
chip_gen: v5e
topology: v5e:2x2
jax: 0.10.0
libtpu: 0.0.40
codegen_flags: <defaults>
</compile_context>

<pallas_src>
import functools

import numpy as np
import jax
import jax.numpy as jnp
from jax.experimental import pallas as pl
from jax.experimental.pallas import tpu as pltpu

# ----------------------------- hyper-params (H) -----------------------------
WIDTH = 32          # H.width
NUM_MIX = 10        # H.num_mixtures
OUT_CH = NUM_MIX * 10


# ------------------------------- Pallas kernel ------------------------------
def _dmol_nll_kernel(y_ref, xt_ref, w_ref, b_ref, o_ref, *, nm):
    """Fused 1x1-conv + discretized-mix-logistic log-prob + per-batch sum.

    y_ref : (C, TM)        channel-major pixel tile of px_z
    xt_ref: (3, TM)        target pixels in [-1, 1], channel-major
    w_ref : (10*nm, C)     out_conv weight, rows channel-group permuted
    b_ref : (10*nm, 1)     out_conv bias (same permutation)
    o_ref : (1, 1)         per-batch accumulator: sum over pixels of
                           logsumexp_k log p(x | component k)
    """
    tm = y_ref.shape[-1]
    tnm = 3 * nm

    # 1x1 conv == (10*nm, C) @ (C, TM) matmul on the MXU, f32 accumulation.
    l = jnp.dot(w_ref[...], y_ref[...], preferred_element_type=jnp.float32)
    l = l + b_ref[...]                                    # (10*nm, TM)

    # Channel-grouped row layout (host-side permutation of w/b):
    #   [logits(nm) | means ch0,ch1,ch2 (3nm) | log_scales ch0..2 (3nm)
    #    | coeffs ch0..2 (3nm)]
    logit_probs = l[0:nm]                                 # (nm, TM)
    means_raw = l[nm:nm + tnm]                            # (3nm, TM)
    log_scales = jnp.maximum(l[nm + tnm:nm + 2 * tnm], -7.0)
    coeffs = jnp.tanh(l[nm + 2 * tnm:nm + 3 * tnm])       # (3nm, TM)

    x0 = xt_ref[0:1, :]                                   # (1, TM)
    x1 = xt_ref[1:2, :]
    x2 = xt_ref[2:3, :]

    # Autoregressive RGB-conditioned means, built as one (3nm, TM) slab.
    means = jnp.concatenate([
        means_raw[0:nm],
        means_raw[nm:2 * nm] + coeffs[0:nm] * x0,
        means_raw[2 * nm:3 * nm]
        + coeffs[nm:2 * nm] * x0 + coeffs[2 * nm:3 * nm] * x1,
    ], axis=0)                                            # (3nm, TM)

    x_all = jnp.concatenate([
        jnp.broadcast_to(x0, (nm, tm)),
        jnp.broadcast_to(x1, (nm, tm)),
        jnp.broadcast_to(x2, (nm, tm)),
    ], axis=0)                                            # (3nm, TM)

    # Discretized logistic log-prob, single merged (3nm, TM) evaluation.
    centered = x_all - means
    inv_stdv = jnp.exp(-log_scales)
    mid_in = inv_stdv * centered
    delta = inv_stdv * (1.0 / 255.0)
    plus_in = mid_in + delta
    min_in = mid_in - delta

    sp_plus = jax.nn.softplus(plus_in)
    sp_min = jax.nn.softplus(min_in)
    sp_mid = jax.nn.softplus(mid_in)

    log_cdf_plus = plus_in - sp_plus          # log sigmoid(plus_in)
    log_one_minus_cdf_min = -sp_min           # log(1 - sigmoid(min_in))
    cdf_plus = jnp.exp(log_cdf_plus)          # sigmoid(plus_in)
    cdf_min = jnp.exp(min_in - sp_min)        # sigmoid(min_in)
    cdf_delta = cdf_plus - cdf_min
    log_pdf_mid = mid_in - log_scales - 2.0 * sp_mid

    log_prob_ch = jnp.where(
        x_all < -0.999,
        log_cdf_plus,
        jnp.where(
            x_all > 0.999,
            log_one_minus_cdf_min,
            jnp.where(
                cdf_delta > 1e-5,
                jnp.log(jnp.maximum(cdf_delta, 1e-12)),
                log_pdf_mid - np.float32(np.log(127.5)),
            ),
        ),
    )                                                     # (3nm, TM)

    # Sum log-probs over the 3 color channels -> (nm, TM)
    log_probs = (log_prob_ch[0:nm]
                 + log_prob_ch[nm:2 * nm]
                 + log_prob_ch[2 * nm:3 * nm])

    # log-softmax over mixture logits (sublane axis)
    lmax = jnp.max(logit_probs, axis=0, keepdims=True)    # (1, TM)
    log_norm = lmax + jnp.log(
        jnp.sum(jnp.exp(logit_probs - lmax), axis=0, keepdims=True))
    log_probs = log_probs + (logit_probs - log_norm)

    # logsumexp over mixture components -> per-pixel mixture log-prob (1, TM)
    m = jnp.max(log_probs, axis=0, keepdims=True)
    lse = m + jnp.log(jnp.sum(jnp.exp(log_probs - m), axis=0, keepdims=True))

    # Fused per-batch reduction: accumulate sum over this pixel tile.
    partial = jnp.sum(lse, axis=1, keepdims=True)         # (1, 1)

    @pl.when(pl.program_id(1) == 0)
    def _():
        o_ref[...] = jnp.zeros_like(o_ref)

    o_ref[...] = o_ref[...] + partial


# ------------------------------ host helpers ---------------------------------
def _channel_group_perm(nm):
    """Permutation of out_conv output channels so the kernel sees
    [logits | means(ch0..2) | log_scales(ch0..2) | coeffs(ch0..2)].

    Original (VDVAE) ordering of l[..., nm:] reshaped to (..., 3, 3*nm) is, for
    each color c: [means_c(nm), log_scales_c(nm), coeffs_c(nm)].
    """
    perm = list(range(nm))
    for kind in range(3):        # 0: means, 1: log_scales, 2: coeffs
        for c in range(3):       # color channel
            base = nm + c * 3 * nm + kind * nm
            perm.extend(range(base, base + nm))
    return np.asarray(perm, dtype=np.int32)


def _pick_tile(hw, tm_max):
    """Largest legal pixel tile: full row if it fits, else a multiple of 128
    dividing H*W."""
    if hw <= tm_max:
        return hw
    t = (tm_max // 128) * 128
    while t >= 128:
        if hw % t == 0:
            return t
        t -= 128
    # TODO(synk): pad + mask ragged pixel counts instead of one full-row tile.
    return hw


def dmol_nll(px_z_nchw, x_target_nhwc, w_conv, b_conv, *,
             num_mix=NUM_MIX, tm_max=1024):
    """distortion_per_pixel: (B,) negative mixture log-prob summed over pixels
    and colors, divided by H*W*3 (matches VDVAE discretized_mix_logistic_loss)."""
    B, C, H, W = px_z_nchw.shape
    assert x_target_nhwc.shape == (B, H, W, 3)
    HW = H * W
    tm = _pick_tile(HW, tm_max)
    assert HW % tm == 0

    # Pixels-on-lanes layout: NCHW just reshapes (no transpose of the big
    # activation tensor); the small target tensor is transposed once.
    y = px_z_nchw.reshape(B, C, HW).astype(jnp.float32)                 # (B, C, HW)
    xt = jnp.transpose(x_target_nhwc, (0, 3, 1, 2)).reshape(
        B, 3, HW).astype(jnp.float32)                                   # (B, 3, HW)

    # 1x1 conv weight (out, in, 1, 1) -> (out, in); channel-group permutation.
    perm = _channel_group_perm(num_mix)
    w2 = w_conv[:, :, 0, 0][perm, :].astype(jnp.float32)                # (10*nm, C)
    b2 = b_conv[perm].reshape(-1, 1).astype(jnp.float32)                # (10*nm, 1)
    out_ch = 10 * num_mix

    kernel = functools.partial(_dmol_nll_kernel, nm=num_mix)

    per_batch_sum = pl.pallas_call(
        kernel,
        out_shape=jax.ShapeDtypeStruct((B, 1, 1), jnp.float32),
        grid_spec=pltpu.PrefetchScalarGridSpec(
            num_scalar_prefetch=0,
            grid=(B, HW // tm),
            in_specs=[
                pl.BlockSpec((None, C, tm), lambda b, i: (b, 0, i)),
                pl.BlockSpec((None, 3, tm), lambda b, i: (b, 0, i)),
                pl.BlockSpec((out_ch, C), lambda b, i: (0, 0)),
                pl.BlockSpec((out_ch, 1), lambda b, i: (0, 0)),
            ],
            out_specs=pl.BlockSpec((None, 1, 1), lambda b, i: (b, 0, 0)),
        ),
        compiler_params=pltpu.CompilerParams(
            dimension_semantics=("parallel", "arbitrary"),
            vmem_limit_bytes=32 * 1024 * 1024),
    )(y, xt, w2, b2)

    ndims_target = H * W * 3
    return -per_batch_sum.reshape(B) / ndims_target                     # (B,)


# ------------------------------ Loss.forward ---------------------------------
def loss_forward(data, params, *, mask_loss_weight):
    """Mirrors Loss.forward from model/loss/dmol_swae_mask.py."""
    x = data['x']
    stats = data['stats']
    x_target = data['x_target']

    distortion_per_pixel = dmol_nll(data['y'], x_target, params['w'], params['b'])

    rate_per_pixel = 0.0
    mask_loss = 0.0
    _ = np.prod(x.shape[1:])  # ndims (computed but unused, as in the reference)
    for statdict in stats:
        rate_per_pixel = rate_per_pixel + (
            jnp.mean(statdict['swae']) if statdict['swae'] is not None else 0.0)
        mask_loss = mask_loss + (
            statdict['mask_loss'] * mask_loss_weight
            if statdict['mask_loss'] is not None else 0.0)

    elbo = jnp.mean(distortion_per_pixel) + rate_per_pixel + mask_loss
    print('mask loss :', mask_loss)   # matches reference (eager); use jax.debug.print under jit
    data['elbo'] = elbo
    data['distortion'] = jnp.mean(distortion_per_pixel)
    data['rate'] = rate_per_pixel
    return data


# ----------------------------------- main ------------------------------------
if __name__ == "__main__":
    B, HH, WW = 2, 8, 8
    key = jax.random.PRNGKey(0)
    k1, k2, k3, k4, k5, k6, k7 = jax.random.split(key, 7)

    # Deterministic "out_conv" parameters (1x1 conv: width -> 10 * num_mix).
    w_conv = 0.05 * jax.random.normal(k1, (OUT_CH, WIDTH, 1, 1), jnp.float32)
    b_conv = jnp.zeros((OUT_CH,), jnp.float32)
    params = {'w': w_conv, 'b': b_conv}

    # Inputs consistent with the module's forward.
    px_z = jax.random.normal(k2, (B, WIDTH, HH, WW), jnp.float32)          # data['y'], NCHW
    x_in = jax.random.normal(k3, (B, 3, HH, WW), jnp.float32)              # data['x'],  NCHW
    x_target = jax.random.uniform(k4, (B, HH, WW, 3), jnp.float32,         # NHWC in [-1,1]
                                  minval=-1.0, maxval=1.0)

    stats = [
        {'swae': jax.random.normal(k5, (B, 16), jnp.float32) ** 2,
         'mask_loss': jnp.abs(jax.random.normal(k6, (), jnp.float32))},
        {'swae': jax.random.normal(k7, (B, 16), jnp.float32) ** 2,
         'mask_loss': None},
    ]

    data = {'x': x_in, 'y': px_z, 'x_target': x_target, 'stats': stats}
    out = loss_forward(data, params, mask_loss_weight=0.1)

    jax.block_until_ready(out['elbo'])
    jax.block_until_ready(out['distortion'])
    print("KERNEL_OK")
</pallas_src>

<mosaic_0001>
module attributes {stable_mosaic.version = 11 : i64} {
  func.func @_dmol_nll_kernel(%arg0: i32, %arg1: i32, %arg2: memref<1x32x64xf32, #tpu.memory_space<vmem>>, %arg3: memref<1x3x64xf32, #tpu.memory_space<vmem>>, %arg4: memref<100x32xf32, #tpu.memory_space<vmem>>, %arg5: memref<100x1xf32, #tpu.memory_space<vmem>>, %arg6: memref<1x1x1xf32, #tpu.memory_space<vmem>>) attributes {dimension_semantics = [#tpu.dimension_semantics<parallel>, #tpu.dimension_semantics<arbitrary>], iteration_bounds = array<i64: 2, 1>, scalar_prefetch = 0 : i64, scratch_operands = 0 : i64, tpu.core_type = #tpu.core_type<tc>, window_params = [{transform_indices = @transform_0, window_bounds = array<i64: 1, 32, 64>}, {transform_indices = @transform_1, window_bounds = array<i64: 1, 3, 64>}, {pipeline_mode = #tpu.pipeline_mode<synchronous>, transform_indices = @transform_2, window_bounds = array<i64: 100, 32>}, {pipeline_mode = #tpu.pipeline_mode<synchronous>, transform_indices = @transform_3, window_bounds = array<i64: 100, 1>}, {transform_indices = @transform_4, window_bounds = array<i64: 1, 1, 1>}]} {
    %c0 = arith.constant 0 : index
    %c0_0 = arith.constant 0 : index
    %0 = vector.load %arg4[%c0, %c0_0] : memref<100x32xf32, #tpu.memory_space<vmem>>, vector<100x32xf32>
    %c0_1 = arith.constant 0 : index
    %c0_2 = arith.constant 0 : index
    %c0_3 = arith.constant 0 : index
    %1 = vector.load %arg2[%c0_1, %c0_2, %c0_3] : memref<1x32x64xf32, #tpu.memory_space<vmem>>, vector<1x32x64xf32>
    %2 = vector.shape_cast %1 : vector<1x32x64xf32> to vector<32x64xf32>
    %cst = arith.constant dense<0.000000e+00> : vector<100x64xf32>
    %3 = tpu.matmul %0, %2, %cst {dimension_numbers = #tpu.dot_dimension_numbers<[1], [0], [0], [1], [0, 0, 1, 1], [], []>} : vector<100x32xf32>, vector<32x64xf32>, vector<100x64xf32> -> vector<100x64xf32>
    %c0_4 = arith.constant 0 : index
    %c0_5 = arith.constant 0 : index
    %4 = vector.load %arg5[%c0_4, %c0_5] : memref<100x1xf32, #tpu.memory_space<vmem>>, vector<100x1xf32>
    %5 = vector.broadcast %4 : vector<100x1xf32> to vector<100x64xf32>
    %6 = arith.addf %3, %5 : vector<100x64xf32>
    %7 = vector.extract_strided_slice %6 {offsets = [0, 0], sizes = [10, 64], strides = [1, 1]} : vector<100x64xf32> to vector<10x64xf32>
    %8 = vector.extract_strided_slice %6 {offsets = [10, 0], sizes = [30, 64], strides = [1, 1]} : vector<100x64xf32> to vector<30x64xf32>
    %9 = vector.extract_strided_slice %6 {offsets = [40, 0], sizes = [30, 64], strides = [1, 1]} : vector<100x64xf32> to vector<30x64xf32>
    %cst_6 = arith.constant -7.000000e+00 : f32
    %10 = vector.broadcast %cst_6 : f32 to vector<30x64xf32>
    %11 = arith.maximumf %9, %10 : vector<30x64xf32>
    %12 = vector.extract_strided_slice %6 {offsets = [70, 0], sizes = [30, 64], strides = [1, 1]} : vector<100x64xf32> to vector<30x64xf32>
    %13 = math.tanh %12 : vector<30x64xf32>
    %c0_7 = arith.constant 0 : index
    %c0_8 = arith.constant 0 : index
    %c0_9 = arith.constant 0 : index
    %14 = vector.load %arg3[%c0_7, %c0_8, %c0_9] : memref<1x3x64xf32, #tpu.memory_space<vmem>>, vector<1x1x64xf32>
    %15 = vector.shape_cast %14 : vector<1x1x64xf32> to vector<1x64xf32>
    %c0_10 = arith.constant 0 : index
    %c1 = arith.constant 1 : index
    %c0_11 = arith.constant 0 : index
    %16 = vector.load %arg3[%c0_10, %c1, %c0_11] : memref<1x3x64xf32, #tpu.memory_space<vmem>>, vector<1x1x64xf32>
    %17 = vector.shape_cast %16 : vector<1x1x64xf32> to vector<1x64xf32>
    %c0_12 = arith.constant 0 : index
    %c2 = arith.constant 2 : index
    %c0_13 = arith.constant 0 : index
    %18 = vector.load %arg3[%c0_12, %c2, %c0_13] : memref<1x3x64xf32, #tpu.memory_space<vmem>>, vector<1x1x64xf32>
    %19 = vector.shape_cast %18 : vector<1x1x64xf32> to vector<1x64xf32>
    %20 = vector.extract_strided_slice %8 {offsets = [0, 0], sizes = [10, 64], strides = [1, 1]} : vector<30x64xf32> to vector<10x64xf32>
    %21 = vector.extract_strided_slice %8 {offsets = [10, 0], sizes = [10, 64], strides = [1, 1]} : vector<30x64xf32> to vector<10x64xf32>
    %22 = vector.extract_strided_slice %13 {offsets = [0, 0], sizes = [10, 64], strides = [1, 1]} : vector<30x64xf32> to vector<10x64xf32>
    %23 = vector.broadcast %15 : vector<1x64xf32> to vector<10x64xf32>
    %24 = arith.mulf %22, %23 : vector<10x64xf32>
    %25 = arith.addf %21, %24 : vector<10x64xf32>
    %26 = vector.extract_strided_slice %8 {offsets = [20, 0], sizes = [10, 64], strides = [1, 1]} : vector<30x64xf32> to vector<10x64xf32>
    %27 = vector.extract_strided_slice %13 {offsets = [10, 0], sizes = [10, 64], strides = [1, 1]} : vector<30x64xf32> to vector<10x64xf32>
    %28 = vector.broadcast %15 : vector<1x64xf32> to vector<10x64xf32>
    %29 = arith.mulf %27, %28 : vector<10x64xf32>
    %30 = arith.addf %26, %29 : vector<10x64xf32>
    %31 = vector.extract_strided_slice %13 {offsets = [20, 0], sizes = [10, 64], strides = [1, 1]} : vector<30x64xf32> to vector<10x64xf32>
    %32 = vector.broadcast %17 : vector<1x64xf32> to vector<10x64xf32>
    %33 = arith.mulf %31, %32 : vector<10x64xf32>
    %34 = arith.addf %30, %33 : vector<10x64xf32>
    %35 = tpu.concatenate %20, %25, %34 in 0 : vector<10x64xf32>, vector<10x64xf32>, vector<10x64xf32> -> vector<30x64xf32>
    %36 = vector.shape_cast %15 : vector<1x64xf32> to vector<1x64xf32>
    %37 = vector.broadcast %36 : vector<1x64xf32> to vector<10x64xf32>
    %38 = vector.shape_cast %17 : vector<1x64xf32> to vector<1x64xf32>
    %39 = vector.broadcast %38 : vector<1x64xf32> to vector<10x64xf32>
    %40 = vector.shape_cast %19 : vector<1x64xf32> to vector<1x64xf32>
    %41 = vector.broadcast %40 : vector<1x64xf32> to vector<10x64xf32>
    %42 = tpu.concatenate %37, %39, %41 in 0 : vector<10x64xf32>, vector<10x64xf32>, vector<10x64xf32> -> vector<30x64xf32>
    %43 = arith.subf %42, %35 : vector<30x64xf32>
    %cst_14 = arith.constant 0.000000e+00 : f32
    %44 = vector.broadcast %cst_14 : f32 to vector<30x64xf32>
    %45 = arith.subf %44, %11 : vector<30x64xf32>
    %46 = math.exp %45 : vector<30x64xf32>
    %47 = arith.mulf %46, %43 : vector<30x64xf32>
    %cst_15 = arith.constant 0.00392156886 : f32
    %48 = vector.broadcast %cst_15 : f32 to vector<30x64xf32>
    %49 = arith.mulf %46, %48 : vector<30x64xf32>
    %50 = arith.addf %47, %49 : vector<30x64xf32>
    %51 = arith.subf %47, %49 : vector<30x64xf32>
    %cst_16 = arith.constant 0.000000e+00 : f32
    %52 = vector.broadcast %cst_16 : f32 to vector<30x64xf32>
    %53 = arith.maximumf %50, %52 : vector<30x64xf32>
    %54 = vector.broadcast %cst_16 : f32 to vector<30x64xf32>
    %55 = arith.subf %50, %54 : vector<30x64xf32>
    %56 = arith.cmpf one, %55, %55 : vector<30x64xf32>
    %57 = vector.broadcast %cst_16 : f32 to vector<30x64xf32>
    %58 = arith.addf %50, %57 : vector<30x64xf32>
    %59 = math.absf %55 : vector<30x64xf32>
    %cst_17 = arith.constant 0.000000e+00 : f32
    %60 = vector.broadcast %cst_17 : f32 to vector<30x64xf32>
    %61 = arith.subf %60, %59 : vector<30x64xf32>
    %62 = math.exp %61 : vector<30x64xf32>
    %63 = math.log1p %62 : vector<30x64xf32>
    %64 = arith.addf %53, %63 : vector<30x64xf32>
    %65 = arith.select %56, %58, %64 : vector<30x64xi1>, vector<30x64xf32>
    %cst_18 = arith.constant 0.000000e+00 : f32
    %66 = vector.broadcast %cst_18 : f32 to vector<30x64xf32>
    %67 = arith.maximumf %51, %66 : vector<30x64xf32>
    %68 = vector.broadcast %cst_18 : f32 to vector<30x64xf32>
    %69 = arith.subf %51, %68 : vector<30x64xf32>
    %70 = arith.cmpf one, %69, %69 : vector<30x64xf32>
    %71 = vector.broadcast %cst_18 : f32 to vector<30x64xf32>
    %72 = arith.addf %51, %71 : vector<30x64xf32>
    %73 = math.absf %69 : vector<30x64xf32>
    %cst_19 = arith.constant 0.000000e+00 : f32
    %74 = vector.broadcast %cst_19 : f32 to vector<30x64xf32>
    %75 = arith.subf %74, %73 : vector<30x64xf32>
    %76 = math.exp %75 : vector<30x64xf32>
    %77 = math.log1p %76 : vector<30x64xf32>
    %78 = arith.addf %67, %77 : vector<30x64xf32>
    %79 = arith.select %70, %72, %78 : vector<30x64xi1>, vector<30x64xf32>
    %cst_20 = arith.constant 0.000000e+00 : f32
    %80 = vector.broadcast %cst_20 : f32 to vector<30x64xf32>
    %81 = arith.maximumf %47, %80 : vector<30x64xf32>
    %82 = vector.broadcast %cst_20 : f32 to vector<30x64xf32>
    %83 = arith.subf %47, %82 : vector<30x64xf32>
    %84 = arith.cmpf one, %83, %83 : vector<30x64xf32>
    %85 = vector.broadcast %cst_20 : f32 to vector<30x64xf32>
    %86 = arith.addf %47, %85 : vector<30x64xf32>
    %87 = math.absf %83 : vector<30x64xf32>
    %cst_21 = arith.constant 0.000000e+00 : f32
    %88 = vector.broadcast %cst_21 : f32 to vector<30x64xf32>
    %89 = arith.subf %88, %87 : vector<30x64xf32>
    %90 = math.exp %89 : vector<30x64xf32>
    %91 = math.log1p %90 : vector<30x64xf32>
    %92 = arith.addf %81, %91 : vector<30x64xf32>
    %93 = arith.select %84, %86, %92 : vector<30x64xi1>, vector<30x64xf32>
    %94 = arith.subf %50, %65 : vector<30x64xf32>
    %cst_22 = arith.constant 0.000000e+00 : f32
    %95 = vector.broadcast %cst_22 : f32 to vector<30x64xf32>
    %96 = arith.subf %95, %79 : vector<30x64xf32>
    %97 = math.exp %94 : vector<30x64xf32>
    %98 = arith.subf %51, %79 : vector<30x64xf32>
    %99 = math.exp %98 : vector<30x64xf32>
    %100 = arith.subf %97, %99 : vector<30x64xf32>
    %101 = arith.subf %47, %11 : vector<30x64xf32>
    %cst_23 = arith.constant 2.000000e+00 : f32
    %102 = vector.broadcast %cst_23 : f32 to vector<30x64xf32>
    %103 = arith.mulf %102, %93 : vector<30x64xf32>
    %104 = arith.subf %101, %103 : vector<30x64xf32>
    %cst_24 = arith.constant -9.990000e-01 : f32
    %105 = vector.broadcast %cst_24 : f32 to vector<30x64xf32>
    %106 = arith.cmpf olt, %42, %105 : vector<30x64xf32>
    %cst_25 = arith.constant 9.990000e-01 : f32
    %107 = vector.broadcast %cst_25 : f32 to vector<30x64xf32>
    %108 = arith.cmpf ogt, %42, %107 : vector<30x64xf32>
    %cst_26 = arith.constant 9.99999974E-6 : f32
    %109 = vector.broadcast %cst_26 : f32 to vector<30x64xf32>
    %110 = arith.cmpf ogt, %100, %109 : vector<30x64xf32>
    %cst_27 = arith.constant 9.99999996E-13 : f32
    %111 = vector.broadcast %cst_27 : f32 to vector<30x64xf32>
    %112 = arith.maximumf %100, %111 : vector<30x64xf32>
    %113 = math.log %112 : vector<30x64xf32>
    %cst_28 = arith.constant 4.8481164 : f32
    %114 = vector.broadcast %cst_28 : f32 to vector<30x64xf32>
    %115 = arith.subf %104, %114 : vector<30x64xf32>
    %116 = arith.select %110, %113, %115 : vector<30x64xi1>, vector<30x64xf32>
    %117 = arith.select %108, %96, %116 : vector<30x64xi1>, vector<30x64xf32>
    %118 = arith.select %106, %94, %117 : vector<30x64xi1>, vector<30x64xf32>
    %119 = vector.extract_strided_slice %118 {offsets = [0, 0], sizes = [10, 64], strides = [1, 1]} : vector<30x64xf32> to vector<10x64xf32>
    %120 = vector.extract_strided_slice %118 {offsets = [10, 0], sizes = [10, 64], strides = [1, 1]} : vector<30x64xf32> to vector<10x64xf32>
    %121 = arith.addf %119, %120 : vector<10x64xf32>
    %122 = vector.extract_strided_slice %118 {offsets = [20, 0], sizes = [10, 64], strides = [1, 1]} : vector<30x64xf32> to vector<10x64xf32>
    %123 = arith.addf %121, %122 : vector<10x64xf32>
    %cst_29 = arith.constant dense<0xFF800000> : vector<64xf32>
    %124 = vector.multi_reduction <maximumf>, %7, %cst_29 [0] : vector<10x64xf32> to vector<64xf32>
    %125 = vector.shape_cast %124 : vector<64xf32> to vector<1x64xf32>
    %126 = vector.broadcast %125 : vector<1x64xf32> to vector<10x64xf32>
    %127 = arith.subf %7, %126 : vector<10x64xf32>
    %128 = math.exp %127 : vector<10x64xf32>
    %cst_30 = arith.constant dense<0.000000e+00> : vector<64xf32>
    %129 = vector.multi_reduction <add>, %128, %cst_30 [0] : vector<10x64xf32> to vector<64xf32>
    %130 = vector.shape_cast %129 : vector<64xf32> to vector<1x64xf32>
    %131 = math.log %130 : vector<1x64xf32>
    %132 = arith.addf %125, %131 : vector<1x64xf32>
    %133 = vector.broadcast %132 : vector<1x64xf32> to vector<10x64xf32>
    %134 = arith.subf %7, %133 : vector<10x64xf32>
    %135 = arith.addf %123, %134 : vector<10x64xf32>
    %cst_31 = arith.constant dense<0xFF800000> : vector<64xf32>
    %136 = vector.multi_reduction <maximumf>, %135, %cst_31 [0] : vector<10x64xf32> to vector<64xf32>
    %137 = vector.shape_cast %136 : vector<64xf32> to vector<1x64xf32>
    %138 = vector.broadcast %137 : vector<1x64xf32> to vector<10x64xf32>
    %139 = arith.subf %135, %138 : vector<10x64xf32>
    %140 = math.exp %139 : vector<10x64xf32>
    %cst_32 = arith.constant dense<0.000000e+00> : vector<64xf32>
    %141 = vector.multi_reduction <add>, %140, %cst_32 [0] : vector<10x64xf32> to vector<64xf32>
    %142 = vector.shape_cast %141 : vector<64xf32> to vector<1x64xf32>
    %143 = math.log %142 : vector<1x64xf32>
    %144 = arith.addf %137, %143 : vector<1x64xf32>
    %cst_33 = arith.constant dense<0.000000e+00> : vector<1xf32>
    %145 = vector.multi_reduction <add>, %144, %cst_33 [1] : vector<1x64xf32> to vector<1xf32>
    %146 = vector.shape_cast %145 : vector<1xf32> to vector<1x1xf32>
    %c0_i32 = arith.constant 0 : i32
    %147 = arith.cmpi eq, %arg1, %c0_i32 : i32
    %148 = arith.extui %147 : i1 to i32
    %c0_i32_34 = arith.constant 0 : i32
    %149 = arith.cmpi ne, %148, %c0_i32_34 : i32
    scf.if %149 {
      %cst_41 = arith.constant 0.000000e+00 : f32
      %156 = vector.broadcast %cst_41 : f32 to vector<1x1xf32>
      %c0_42 = arith.constant 0 : index
      %c0_43 = arith.constant 0 : index
      %c0_44 = arith.constant 0 : index
      %157 = vector.load %arg6[%c0_42, %c0_43, %c0_44] : memref<1x1x1xf32, #tpu.memory_space<vmem>>, vector<1x1x1xf32>
      %158 = vector.shape_cast %157 : vector<1x1x1xf32> to vector<1x1xf32>
      %159 = vector.shape_cast %156 : vector<1x1xf32> to vector<1x1x1xf32>
      tpu.vector_store %arg6[%c0_42, %c0_43, %c0_44], %159 {strides = array<i32>} : memref<1x1x1xf32, #tpu.memory_space<vmem>>, vector<1x1x1xf32>,
    } else {
    }
    %c0_35 = arith.constant 0 : index
    %c0_36 = arith.constant 0 : index
    %c0_37 = arith.constant 0 : index
    %150 = vector.load %arg6[%c0_35, %c0_36, %c0_37] : memref<1x1x1xf32, #tpu.memory_space<vmem>>, vector<1x1x1xf32>
    %151 = vector.shape_cast %150 : vector<1x1x1xf32> to vector<1x1xf32>
    %152 = arith.addf %151, %146 : vector<1x1xf32>
    %c0_38 = arith.constant 0 : index
    %c0_39 = arith.constant 0 : index
    %c0_40 = arith.constant 0 : index
    %153 = vector.load %arg6[%c0_38, %c0_39, %c0_40] : memref<1x1x1xf32, #tpu.memory_space<vmem>>, vector<1x1x1xf32>
    %154 = vector.shape_cast %153 : vector<1x1x1xf32> to vector<1x1xf32>
    %155 = vector.shape_cast %152 : vector<1x1xf32> to vector<1x1x1xf32>
    tpu.vector_store %arg6[%c0_38, %c0_39, %c0_40], %155 {strides = array<i32>} : memref<1x1x1xf32, #tpu.memory_space<vmem>>, vector<1x1x1xf32>,
    return
  }
  func.func @transform_0(%arg0: i32, %arg1: i32) -> (i32, i32, i32) {
    %c0_i32 = arith.constant 0 : i32
    %c0_i32_0 = arith.constant 0 : i32
    return %arg0, %c0_i32, %arg1 : i32, i32, i32
  }
  func.func @transform_1(%arg0: i32, %arg1: i32) -> (i32, i32, i32) {
    %c0_i32 = arith.constant 0 : i32
    %c0_i32_0 = arith.constant 0 : i32
    return %arg0, %c0_i32, %arg1 : i32, i32, i32
  }
  func.func @transform_2(%arg0: i32, %arg1: i32) -> (i32, i32) {
    %c0_i32 = arith.constant 0 : i32
    %c0_i32_0 = arith.constant 0 : i32
    %c0_i32_1 = arith.constant 0 : i32
    return %c0_i32, %c0_i32_0 : i32, i32
  }
  func.func @transform_3(%arg0: i32, %arg1: i32) -> (i32, i32) {
    %c0_i32 = arith.constant 0 : i32
    %c0_i32_0 = arith.constant 0 : i32
    %c0_i32_1 = arith.constant 0 : i32
    return %c0_i32, %c0_i32_0 : i32, i32
  }
  func.func @transform_4(%arg0: i32, %arg1: i32) -> (i32, i32, i32) {
    %c0_i32 = arith.constant 0 : i32
    %c0_i32_0 = arith.constant 0 : i32
    %c0_i32_1 = arith.constant 0 : i32
    return %arg0, %c0_i32, %c0_i32_0 : i32, i32, i32
  }
}

</mosaic_0001>

<bundles_post_ra>
// kernel: tpu_custom_call.1
= control target key start
LH: loop header
LB: loop body
LE: loop exit
PB: predicated region body
PF: predicated region fallthrough
CT: control target
= control target key end

     0   :  { %s1235_s15 = smov 0   ;;  %s1237_s16 = smov 0   ;;  %s1812_s0 = inlined_call_operand.vmem [shape: f32[2,32,64], index: 0, kind: input, shape index: {}]   ;;  %s1813_s1 = inlined_call_operand.vmem [shape: f32[2,3,64], index: 1, kind: input, shape index: {}]   ;;  %s1814_s2 = inlined_call_operand.vmem [shape: f32[100,32], index: 2, kind: input, shape index: {}]   ;;  %s1815_s3 = inlined_call_operand.vmem [shape: f32[100,1], index: 3, kind: input, shape index: {}]   ;;  %s1816_s4 = inlined_call_operand.vmem [shape: f32[2,1,1], index: 4, kind: output, shape index: {}]  }
   0x1   :  { %s1239_s17 = smov 0  }
   0x2 LB: > { %s26_s18 = sadd.s32 1, %s1202_s16  ;;  %p1014_p0 = scmp.ge.s32.totalorder %s1206_s17, 1  ;;  %s1206_s17 = sphi %s1239_s17, %s14_s17   ;;  %s1202_s16 = sphi %s1237_s16, %s1850_s16   ;;  %s1198_s15 = sphi %s1235_s15, %s1849_s15  }
   0x3   : > { %p28_p1 = scmp.ge.s32.totalorder %s26_s18, 2  ;;  %p193_p2 = scmp.lt.s32.totalorder %s1206_s17, 3 }
   0x5   : > { %s1852_s18 = smov (%p28_p1, %s26_s18), 0  ;;  %p194_p3 = pnand %p1014_p0, %p193_p2 }
   0x6   : > { %p227_p4 = scmp.lt.s32.totalorder (!%p194_p3), %s1198_s15, 1 }
   0x7   : > { %197 = sbr.rel (%p194_p3) target bundleno = 458 (0x1ca), region = 36 }
   0xc   : > { %v272_v0 = vld [vmem:[%s1815_s3 + $0x50] sm:$0xff]  ;;  %v1208_v1 = vmov 0   ;;  %s1854_s15 = smov (!%p227_p4, %s1198_s15), 1  ;;  %v270_v2 = vld [vmem:[%s1815_s3 + $0x40] sm:$0xff]  ;;  %v273_v5 = vld [vmem:[%s1815_s3 + $0x58] sm:$0xff]  ;;  %vm340_vm0 = vcmask 261120  }
   0xd   : > { %1076 = vset.pattern.permute.xlu0 %v1208_v1  ;;  %1077 = vset.pattern.permute.xlu1 %v1208_v1  ;;  %s1037_s23 = sshll.u32 %s1854_s15, 5  ;;  %s1017_s24 = sshll.u32 %s1854_s15, 2  ;;  %v248_v8 = vld [vmem:[%s1814_s2 + $0x18] sm:$0xff]  ;;  %v251_v9 = vld [vmem:[%s1814_s2 + $0x30] sm:$0xff]  ;;  %v245_v11 = vld [vmem:[%s1814_s2] sm:$0xff]  ;;  %vm861_vm1 = vcmask 523264  }
   0xe   : > { %327 = vperm.xlu0 %1076, %v272_v0   ;;  %1078 = vset.pattern.permute.xlu2 %v1208_v1  ;;  %s234_s27 = scalar_lea.vmem %s1812_s0, %s1037_s23  ;;  %s1269_s30 = scalar_lea.vmem %s1813_s1, %s1017_s24  ;;  %v255_v10 = vld [vmem:[%s1814_s2 + $0x50] sm:$0xff]  ;;  %v271_v12 = vld [vmem:[%s1815_s3 + $0x48] sm:$0xff]  ;;  %v269_v13 = vld [vmem:[%s1815_s3 + $0x38] sm:$0xff]  ;;  %vm863_vm2 = vcmask 517120   ;;  %vm453_vm3 = vcmask 1045504   ;;  %vm477_vm4 = vcmask 1043456  }
   0xf   : > { %317 = vperm.xlu1 %1077, %v270_v2   ;;  %v261_v3 = vld [vmem:[%s234_s27 + $0x18] sm:$0xff]  ;;  %v260_v4 = vld [vmem:[%s234_s27 + $0x10] sm:$0xff]  ;;  %v259_v6 = vld [vmem:[%s234_s27 + $0x8] sm:$0xff]  ;;  %vm506_vm5 = vcmask 1041408   ;;  %s244_s12 = scalar_lea.vmem %s1816_s4, %s1854_s15 }
  0x10   : > { %1038 = vmatpush.msra.mxu1 %v261_v3  ;;  %1039 = vmatpush.msra.mxu2 %v261_v3  ;;  %v258_v7 = vld [vmem:[%s234_s27] sm:$0xff]  ;;  %v252_v16 = vld [vmem:[%s1814_s2 + $0x38] sm:$0xff]  ;;  %v246_v18 = vld [vmem:[%s1814_s2 + $0x8] sm:$0xff] }
  0x11   : > { %1040 = vmatpush.msra.mxu3 %v261_v3  ;;  %392 = vmatpush.msra.mxu0 %v261_v3  ;;  %v274_v14 = vld [vmem:[%s1815_s3 + $0x60] sm:$0xf]  ;;  %v256_v17 = vld [vmem:[%s1814_s2 + $0x58] sm:$0xff]  ;;  %v267_v20 = vld [vmem:[%s1815_s3 + $0x28] sm:$0xff] }
  0x12   : > { %1041 = vmatpush.msra.mxu1 %v260_v4  ;;  %1042 = vmatpush.msra.mxu2 %v260_v4  ;;  %v249_v15 = vld [vmem:[%s1814_s2 + $0x20] sm:$0xff]  ;;  %v265_v19 = vld [vmem:[%s1815_s3 + $0x18] sm:$0xff]  ;;  %v268_v21 = vld [vmem:[%s1815_s3 + $0x30] sm:$0xff] }
  0x13   : > { %1043 = vmatpush.msra.mxu3 %v260_v4  ;;  %393 = vmatpush.msra.mxu0 %v260_v4  ;;  %v250_v22 = vld [vmem:[%s1814_s2 + $0x28] sm:$0xff]  ;;  %v253_v23 = vld [vmem:[%s1814_s2 + $0x40] sm:$0xff]  ;;  %v247_v25 = vld [vmem:[%s1814_s2 + $0x10] sm:$0xff] }
  0x14   : > { %1044 = vmatpush.msra.mxu1 %v259_v6  ;;  %1045 = vmatpush.msra.mxu2 %v259_v6  ;;  %v257_v24 = vld [vmem:[%s1814_s2 + $0x60] sm:$0xf]  ;;  %v264_v26 = vld [vmem:[%s1815_s3 + $0x10] sm:$0xff]  ;;  %v254_v29 = vld [vmem:[%s1814_s2 + $0x48] sm:$0xff] }
  0x15   : > { %1046 = vmatpush.msra.mxu3 %v259_v6  ;;  %394 = vmatpush.msra.mxu0 %v259_v6  ;;  %v262_v27 = vld [vmem:[%s1815_s3] sm:$0xff]  ;;  %v263_v30 = vld [vmem:[%s1815_s3 + $0x8] sm:$0xff] }
  0x16   : > { %332 = vperm.xlu0 %1076, %v273_v5   ;;  %1047 = vmatpush.msra.mxu1 %v258_v7  ;;  %v266_v28 = vld [vmem:[%s1815_s3 + $0x20] sm:$0xff] }
  0x17   : > { %1048 = vmatpush.msra.mxu2 %v258_v7  ;;  %1049 = vmatpush.msra.mxu3 %v258_v7 }
  0x18   : > { %395 = vmatpush.msra.mxu0 %v258_v7  ;;  %1021 = vmatmul.msk.f32.vlgmr.msra.gmra.mxu1 %vm340_vm0, %v248_v8 }
  0x19   : > { %1024 = vmatmul.msk.f32.vlgmr.msra.gmra.mxu2 %vm340_vm0, %v251_v9  ;;  %1028 = vmatmul.msk.f32.vlgmr.msra.gmra.mxu3 %vm340_vm0, %v255_v10 }
  0x1a   : > { %1018 = vmatmul.msk.f32.vlgmr.msra.gmra.mxu0 %vm340_vm0, %v245_v11  ;;  %322 = vperm.xlu1 %1077, %v271_v12  }
  0x1b   : > { %337 = vperm.xlu2 %1078, %v274_v14  }
  0x1e   : > { %312 = vperm.xlu0 %1076, %v269_v13   ;;  %v1386_v13 = vld [vmem:[%s1269_s30] ss:$0 sm:$0xff] }
  0x20   : > { %1022 = vmatmul.msk.f32.gmra.mxu1 %vm340_vm0, %v249_v15 }
  0x21   : > { %1025 = vmatmul.msk.f32.gmra.mxu2 %vm340_vm0, %v252_v16  ;;  %1029 = vmatmul.msk.f32.gmra.mxu3 %vm340_vm0, %v256_v17 }
  0x22   : > { %1019 = vmatmul.msk.f32.gmra.mxu0 %vm340_vm0, %v246_v18  ;;  %292 = vperm.xlu1 %1077, %v265_v19  }
  0x23   : > { %307 = vperm.xlu2 %1078, %v268_v21  }
  0x26   : > { %302 = vperm.xlu0 %1076, %v267_v20  }
  0x28   : > { %1023 = vmatmul.msk.f32.gmra.mxu1 %vm340_vm0, %v250_v22 }
  0x29   : > { %1026 = vmatmul.msk.f32.gmra.mxu2 %vm340_vm0, %v253_v23  ;;  %1030 = vmatmul.msk.f32.gmra.mxu3 %vm340_vm0, %v257_v24 }
  0x2a   : > { %1020 = vmatmul.msk.f32.gmra.mxu0 %vm340_vm0, %v247_v25  ;;  %287 = vperm.xlu1 %1077, %v264_v26   ;;  %v1405_v25 = vld [vmem:[%s1269_s30 + $0x1] ss:$0 sm:$0xff] }
  0x2b   : > { %297 = vperm.xlu2 %1078, %v266_v28  }
  0x2e   : > { %277 = vperm.xlu0 %1076, %v262_v27  }
  0x31   : > { %1027 = vmatmul.msk.f32.gmra.mxu2 %vm340_vm0, %v254_v29 }
  0x33   : > { %282 = vperm.xlu2 %1078, %v263_v30  }
  0x75   : > { %v338_v32 = vpop.permute.xlu2 %337 }
  0x7d   : > { %v308_v34 = vpop.permute.xlu2 %307 }
  0x80   : > { %v328_v31 = vpop.permute.xlu0 %327 }
  0x81   : > { %v318_v35 = vpop.permute.xlu1 %317 }
  0x85   : > { %v1356_v37 = vpop.permute.xlu2 %297 }
  0x88   : > { %v333_v33 = vpop.permute.xlu0 %332 }
  0x8c   : > { %v1358_v38 = vpop.permute.xlu1 %322 }
  0x8d   : > { %v283_v42 = vpop.permute.xlu2 %282 }
  0x90   : > { %v313_v36 = vpop.permute.xlu0 %312 }
  0x94   : > { %v1362_v43 = vpop.permute.xlu1 %292 }
  0x95   : > { %v1360_v39 = vpop.f32.mrf.mxu1 }
  0x97   : > { %v397_v41 = vpop.f32.mrf.mxu0 }
  0x98   : > { %v303_v40 = vpop.permute.xlu0 %302 }
  0x9c   : > { %v415_v44 = vpop.f32.mrf.mxu2  ;;  %v427_v45 = vpop.f32.mrf.mxu3 }
  0x9d   : > { %v1364_v46 = vpop.f32.mrf.mxu1  ;;  %v428_v56 = vadd.f32 %v427_v45, %v328_v31  ;;  %v288_v60 = vpop.permute.xlu1 %287  ;;  %v1401_v23 = vadd.f32 %v415_v44, %v308_v34 }
  0x9f   : > { %v400_v49 = vpop.f32.mrf.mxu0 }
  0xa0   : > { %v278_v47 = vpop.permute.xlu0 %277  ;;  %v1370_v51 = vadd.f32 %v400_v49, %v283_v42  ;;  %v1819_v42 = vmax.f32 %v1401_v23, -7.0 }
  0xa1   : > { %v1366_v48 = vadd.f32 %v397_v41, %v278_v47 }
  0xa2   : > { %v864_v52 = vsel %vm863_vm2, %v1370_v51, -inf  ;;  %v487_v5 = vrot.slane %v1370_v51, 2 }
  0xa3   : > { %v862_v50 = vsel %vm861_vm1, %v1366_v48, -inf }
  0xa4   : > { %v865_v53 = vmax.f32 %v862_v50, %v864_v52  ;;  %v418_v54 = vpop.f32.mrf.mxu2  ;;  %v430_v55 = vpop.f32.mrf.mxu3 }
  0xa5   : > { %v431_v58 = vadd.f32 %v430_v55, %v333_v33  ;;  %v412_v59 = vpop.f32.mrf.mxu1  ;;  %v1391_v18 = vadd.f32 %v418_v54, %v313_v36 }
  0xa6   : > { %v866_v57 = vrot.slane %v865_v53, 4  ;;  %v1374_v61 = vadd.f32 %v412_v59, %v303_v40  ;;  %v407_v59 = vadd.f32 %v1360_v39, %v1362_v43 }
  0xa7   : > { %1082 = vtanh.f32 %v431_v58  ;;  %v403_v63 = vpop.f32.mrf.mxu0  ;;  %v1818_v31 = vmax.f32 %v1391_v18, -7.0  ;;  %v517_v58 = vsub.f32 0.0, %v1819_v42 }
  0xa8   : > { %v867_v62 = vmax.f32 %v865_v53, %v866_v57  ;;  %v1820_v0 = vmax.f32 %v1374_v61, -7.0  ;;  %v1377_v1 = vadd.f32 %v403_v63, %v288_v60  ;;  %1084 = vtanh.f32 %v428_v56 }
  0xa9   : > { %v518_v50 = vsub.f32 0.0, %v1818_v31  ;;  %v410_v53 = vadd.f32 %v1364_v46, %v1356_v37  ;;  %v1434_v37 = vld [vmem:[%s1269_s30 + $0x2] ss:$0 sm:$0xff] }
  0xaa   : > { %v868_v2 = vrot.slane %v867_v62, 2  ;;  %v516_v3 = vsub.f32 0.0, %v1820_v0  ;;  %v488_v7 = vrot.slane %v1377_v1, 2 }
  0xac   : > { %v869_v4 = vmax.f32 %v867_v62, %v868_v2  ;;  %v520_v6 = vmul.f32 1.442695, %v516_v3  ;;  %v421_v8 = vpop.f32.mrf.mxu2  ;;  %v433_v9 = vpop.f32.mrf.mxu3  ;;  %v489_v20 = vsel %vm453_vm3, %v487_v5, %v488_v7  ;;  %v524_v2 = vmul.f32 1.442695, %v518_v50 }
  0xad   : > { %v1083_v10 = vpop.eup %1082  ;;  %v1383_v12 = vadd.f32 %v421_v8, %v318_v35  ;;  %v434_v14 = vadd.f32 %v433_v9, %v338_v32  ;;  %v512_v28 = vsub.f32 %v1386_v13, %v489_v20  ;;  %v522_v9 = vmul.f32 1.442695, %v517_v58 }
  0xae   : > { %v870_v11 = vrot.slane %v869_v4, 1  ;;  %1086 = vpow2.f32 %v520_v6  ;;  %v1085_v15 = vpop.eup %1084  ;;  %v462_v19 = vmul.f32 %v1083_v10, %v1386_v13  ;;  %v473_v41 = vmul.f32 %v1083_v10, %v1405_v25 }
  0xaf   : > { %v1817_v17 = vmax.f32 %v1383_v12, -7.0  ;;  %1088 = vtanh.f32 %v434_v14  ;;  %v461_v24 = vmul.f32 %v1085_v15, %v1386_v13 }
  0xb0   : > { %v1388_v16 = vmax.f32 %v869_v4, %v870_v11  ;;  %v466_v32 = vrot.slane %v462_v19, 2  ;;  %1090 = vtanh.f32 %v1383_v12  ;;  %v478_v54 = vrot.slane %v473_v41, 4 }
  0xb1   : > { %v519_v29 = vsub.f32 0.0, %v1817_v17  ;;  %v465_v44 = vrot.slane %v461_v24, 2 }
  0xb2   : > { %v872_v21 = vsub.f32 %v1366_v48, %v1388_v16  ;;  %v873_v22 = vsub.f32 %v1370_v51, %v1388_v16 }
  0xb3   : > { %v526_v47 = vmul.f32 1.442695, %v519_v29  ;;  %v467_v52 = vsel %vm453_vm3, %v465_v44, %v466_v32  ;;  %v470_v10 = vadd.f32 %v465_v44, %v407_v59  ;;  %v1452_v44 = vsel %vm477_vm4, %v1405_v25, %v1434_v37 }
  0xb4   : > { %v874_v26 = vmul.f32 1.442695, %v872_v21  ;;  %v876_v27 = vmul.f32 1.442695, %v873_v22  ;;  %v1087_v30 = vpop.eup %1086  ;;  %v424_v33 = vpop.f32.mrf.mxu2  ;;  %v471_v62 = vadd.f32 %v467_v52, %v410_v53 }
  0xb5   : > { %v532_v34 = vmul.f32 0.003921569, %v1087_v30  ;;  %v1412_v35 = vmul.f32 %v1087_v30, %v512_v28  ;;  %v425_v36 = vadd.f32 %v424_v33, %v1358_v38  ;;  %v1089_v40 = vpop.eup %1088  ;;  %v483_v20 = vadd.f32 %v478_v54, %v470_v10 }
  0xb6   : > { %1092 = vpow2.f32 %v874_v26  ;;  %v474_v49 = vmul.f32 %v1089_v40, %v1405_v25  ;;  %v1091_v38 = vpop.eup %1090 }
  0xb7   : > { %1094 = vpow2.f32 %v876_v27  ;;  %v1418_v45 = vadd.f32 %v532_v34, %v1412_v35  ;;  %v449_v3 = vmul.f32 %v1091_v38, %v1386_v13  ;;  %v1439_v39 = vsub.f32 %v1412_v35, %v532_v34 }
  0xb8   : > { %1096 = vtanh.f32 %v425_v36  ;;  %v479_v56 = vrot.slane %v474_v49, 4  ;;  %v700_v43 = vand.u32 2147483647, %v1412_v35  ;;  %v501_v36 = vrot.slane %v483_v20, 2 }
  0xb9   : > { %v556_v55 = vand.u32 2147483647, %v1418_v45  ;;  %1098 = vpow2.f32 %v526_v47  ;;  %v454_v22 = vrot.slane %v449_v3, 2  ;;  %v628_v27 = vand.u32 2147483647, %v1439_v39 }
  0xba   : > { %v480_v63 = vsel %vm477_vm4, %v478_v54, %v479_v56  ;;  %1100 = vpow2.f32 %v524_v2  ;;  %v704_v28 = vsub.f32 0.0, %v700_v43  ;;  %vm548_vm7 = vcmp.ne.f32.partialorder %v1418_v45, %v1418_v45 }
  0xbb   : > { %v560_v5 = vsub.f32 0.0, %v556_v55  ;;  %v484_v6 = vadd.f32 %v480_v63, %v471_v62  ;;  %1102 = vpow2.f32 %v522_v9  ;;  %v632_v53 = vsub.f32 0.0, %v628_v27 }
  0xbc   : > { %v1093_v57 = vpop.eup %1092  ;;  %v708_v50 = vmul.f32 1.442695, %v704_v28  ;;  %v1462_v55 = vsel %vm506_vm5, %v1386_v13, %v1405_v25  ;;  %v544_v27 = vmax.f32 %v1418_v45, 0.0  ;;  %vm620_vm0 = vcmp.ne.f32.partialorder %v1439_v39, %v1439_v39 }
  0xbd   : > { %v1095_v60 = vpop.eup %1094  ;;  %v878_v46 = vsel %vm861_vm1, %v1093_v57, 0.0  ;;  %v502_v11 = vrot.slane %v484_v6, 2  ;;  %v564_v21 = vmul.f32 1.442695, %v560_v5  ;;  %v636_v5 = vmul.f32 1.442695, %v632_v53 }
  0xbe   : > { %v879_v4 = vsel %vm863_vm2, %v1095_v60, 0.0  ;;  %v1097_v8 = vpop.eup %1096 }
  0xbf   : > { %v450_v14 = vmul.f32 %v1097_v8, %v1386_v13  ;;  %v1099_v15 = vpop.eup %1098  ;;  %v880_v19 = vadd.f32 %v879_v4, %v878_v46  ;;  %v515_v24 = vsub.f32 %v1434_v37, %v502_v11  ;;  %1104 = vpow2.f32 %v564_v21 }
  0xc0   : > { %v535_v29 = vmul.f32 0.003921569, %v1099_v15  ;;  %v1101_v49 = vpop.eup %1100  ;;  %v503_v38 = vsel %vm453_vm3, %v501_v36, %v502_v11  ;;  %1106 = vpow2.f32 %v708_v50 }
  0xc1   : > { %v455_v26 = vrot.slane %v450_v14, 2  ;;  %v1445_v30 = vmul.f32 %v1099_v15, %v515_v24  ;;  %v881_v34 = vrot.slane %v880_v19, 4  ;;  %v1103_v56 = vpop.eup %1102  ;;  %v534_v62 = vmul.f32 0.003921569, %v1101_v49 }
  0xc2   : > { %v533_v4 = vmul.f32 0.003921569, %v1103_v56 }
  0xc3   : > { %v456_v32 = vsel %vm453_vm3, %v454_v22, %v455_v26  ;;  %v460_v33 = vadd.f32 %v455_v26, %v407_v59  ;;  %v1455_v47 = vadd.f32 %v535_v29, %v1445_v30  ;;  %v882_v57 = vadd.f32 %v881_v34, %v880_v19 }
  0xc4   : > { %v459_v40 = vadd.f32 %v456_v32, %v1377_v1  ;;  %v703_v8 = vand.u32 2147483647, %v1445_v30  ;;  %v688_v19 = vmax.f32 %v1412_v35, 0.0  ;;  %v616_v32 = vmax.f32 %v1439_v39, 0.0 }
  0xc5   : > { %v495_v41 = vrot.slane %v460_v33, 2  ;;  %v559_v60 = vand.u32 2147483647, %v1455_v47  ;;  %v1105_v46 = vpop.eup %1104  ;;  %v883_v6 = vrot.slane %v882_v57, 2  ;;  %v1498_v33 = vsub.f32 %v1445_v30, %v535_v29 }
  0xc6   : > { %v494_v52 = vrot.slane %v459_v40, 2  ;;  %v572_v43 = vadd.f32 1.0, %v1105_v46  ;;  %v1483_v14 = vpop.eup %1106  ;;  %v707_v20 = vsub.f32 0.0, %v703_v8  ;;  %v575_v28 = vmul.f32 -0.5, %v1105_v46 }
  0xc7   : > { %v508_v54 = vsel %vm477_vm4, %v495_v41, %v503_v38  ;;  %v563_v25 = vsub.f32 0.0, %v559_v60  ;;  %v1485_v15 = vadd.f32 %v883_v6, %v882_v57  ;;  %v1501_v40 = vadd.f32 1.0, %v1483_v14 }
  0xc8   : > { %v496_v58 = vsel %vm453_vm3, %v494_v52, %v495_v41  ;;  %v514_v59 = vsub.f32 %v1452_v44, %v508_v54  ;;  %v1506_v52 = vmul.f32 -0.5, %v1483_v14  ;;  %vm551_vm8 = vcmp.ne.f32.partialorder %v1455_v47, %v1455_v47 }
  0xc9   : > { %v507_v63 = vsel %vm506_vm5, %v488_v7, %v496_v58  ;;  %v570_v1 = vmul.f32 1.442695, %v563_v25  ;;  %v885_v41 = vrot.slane %v1485_v15, 1  ;;  %v547_v58 = vmax.f32 %v1455_v47, 0.0 }
  0xca   : > { %v513_v2 = vsub.f32 %v1462_v55, %v507_v63  ;;  %v1471_v3 = vmul.f32 %v1101_v49, %v514_v59  ;;  %v714_v49 = vmul.f32 1.442695, %v707_v20  ;;  %v576_v59 = vadd.f32 1.0, %v575_v28 }
  0xcb   : > { %1108 = vpow2.f32 %v570_v1  ;;  %v619_v63 = vmax.f32 %v1498_v33, 0.0 }
  0xcc   : > { %v1474_v9 = vmul.f32 %v1103_v56, %v513_v2  ;;  %v1477_v10 = vadd.f32 %v534_v62, %v1471_v3  ;;  %1110 = vpow2.f32 %v636_v5  ;;  %v1492_v22 = vsub.f32 %v1471_v3, %v534_v62 }
  0xcd   : > { %1112 = vlog2.f32 %v572_v43  ;;  %v702_v50 = vand.u32 2147483647, %v1471_v3  ;;  %v578_v62 = vand.u32 2147483647, %v1105_v46  ;;  %v631_v2 = vand.u32 2147483647, %v1498_v33 }
  0xce   : > { %v1480_v7 = vadd.f32 %v533_v4, %v1474_v9  ;;  %v558_v11 = vand.u32 2147483647, %v1477_v10  ;;  %v1489_v21 = vsub.f32 %v1474_v9, %v533_v4  ;;  %v630_v29 = vand.u32 2147483647, %v1492_v22 }
  0xcf   : > { %v701_v57 = vand.u32 2147483647, %v1474_v9  ;;  %v706_v8 = vsub.f32 0.0, %v702_v50  ;;  %v635_v1 = vsub.f32 0.0, %v631_v2  ;;  %v577_v20 = vmul.f32 %v1105_v46, %v576_v59 }
  0xd0   : > { %v557_v24 = vand.u32 2147483647, %v1480_v7  ;;  %v562_v26 = vsub.f32 0.0, %v558_v11  ;;  %v629_v54 = vand.u32 2147483647, %v1489_v21  ;;  %v634_v6 = vsub.f32 0.0, %v630_v29 }
  0xd1   : > { %v1109_v38 = vpop.eup %1108  ;;  %v705_v11 = vsub.f32 0.0, %v701_v57  ;;  %vm1517_vm6 = vcmp.lt.f32.partialorder %v578_v62, 0.0004427343  ;;  %v545_v62 = vmax.f32 %v1480_v7, 0.0  ;;  %vm550_vm11 = vcmp.ne.f32.partialorder %v1477_v10, %v1477_v10 }
  0xd2   : > { %v561_v34 = vsub.f32 0.0, %v557_v24  ;;  %v568_v36 = vmul.f32 1.442695, %v562_v26  ;;  %v1510_v56 = vpop.eup %1110  ;;  %v599_v60 = vadd.f32 1.0, %v1109_v38  ;;  %v602_v4 = vmul.f32 -0.5, %v1109_v38 }
  0xd3   : > { %v1113_v25 = vpop.eup %1112  ;;  %v633_v5 = vsub.f32 0.0, %v629_v54  ;;  %v644_v43 = vadd.f32 1.0, %v1510_v56  ;;  %v640_v26 = vmul.f32 1.442695, %v634_v6  ;;  %v546_v54 = vmax.f32 %v1477_v10, 0.0 }
  0xd4   : > { %v566_v53 = vmul.f32 1.442695, %v561_v34  ;;  %1114 = vpow2.f32 %v568_v36  ;;  %v574_v34 = vmul.f32 0.6931472, %v1113_v25  ;;  %v605_v46 = vand.u32 2147483647, %v1109_v38 }
  0xd5   : > { %v638_v24 = vmul.f32 1.442695, %v633_v5  ;;  %v710_v2 = vmul.f32 1.442695, %v705_v11  ;;  %v618_v0 = vmax.f32 %v1492_v22, 0.0  ;;  %vm549_vm12 = vcmp.ne.f32.partialorder %v1480_v7, %v1480_v7 }
  0xd6   : > { %1116 = vpow2.f32 %v566_v53  ;;  %v642_v53 = vmul.f32 1.442695, %v635_v1  ;;  %v580_v6 = vsel %vm1517_vm6, %v577_v20, %v574_v34  ;;  %v647_v1 = vmul.f32 -0.5, %v1510_v56 }
  0xd7   : > { %1118 = vlog2.f32 %v599_v60  ;;  %v712_v60 = vmul.f32 1.442695, %v706_v8  ;;  %vm1536_vm9 = vcmp.lt.f32.partialorder %v605_v46, 0.0004427343  ;;  %v617_v34 = vmax.f32 %v1489_v21, 0.0 }
  0xd8   : > { %1120 = vpow2.f32 %v714_v49  ;;  %v603_v49 = vadd.f32 1.0, %v602_v4  ;;  %vm621_vm5 = vcmp.ne.f32.partialorder %v1489_v21, %v1489_v21 }
  0xd9   : > { %1122 = vlog2.f32 %v644_v43 }
  0xda   : > { %v1115_v28 = vpop.eup %1114  ;;  %1124 = vpow2.f32 %v638_v24  ;;  %v604_v11 = vmul.f32 %v1109_v38, %v603_v49  ;;  %v608_v38 = vadd.f32 %v580_v6, %v544_v27 }
  0xdb   : > { %v590_v29 = vadd.f32 1.0, %v1115_v28  ;;  %v593_v57 = vmul.f32 -0.5, %v1115_v28  ;;  %1126 = vpow2.f32 %v640_v26  ;;  %v596_v43 = vand.u32 2147483647, %v1115_v28 }
  0xdc   : > { %v1522_v50 = vpop.eup %1116 }
  0xdd   : > { %v1119_v59 = vpop.eup %1118  ;;  %v581_v25 = vadd.f32 1.0, %v1522_v50  ;;  %1128 = vlog2.f32 %v590_v29  ;;  %v584_v8 = vmul.f32 -0.5, %v1522_v50  ;;  %v594_v26 = vadd.f32 1.0, %v593_v57 }
  0xde   : > { %v1526_v5 = vpop.eup %1120  ;;  %v601_v4 = vmul.f32 0.6931472, %v1119_v59  ;;  %1130 = vpow2.f32 %v642_v53  ;;  %v650_v29 = vand.u32 2147483647, %v1510_v56  ;;  %v648_v57 = vadd.f32 1.0, %v647_v1 }
  0xdf   : > { %1132 = vlog2.f32 %v581_v25  ;;  %v1123_v24 = vpop.eup %1122  ;;  %v585_v17 = vadd.f32 1.0, %v584_v8  ;;  %vm1547_vm10 = vcmp.lt.f32.partialorder %v596_v43, 0.0004427343  ;;  %v595_v6 = vmul.f32 %v1115_v28, %v594_v26 }
  0xe0   : > { %1134 = vpow2.f32 %v712_v60  ;;  %v1125_v36 = vpop.eup %1124  ;;  %v607_v53 = vsel %vm1536_vm9, %v604_v11, %v601_v4  ;;  %v587_v60 = vand.u32 2147483647, %v1522_v50  ;;  %v646_v8 = vmul.f32 0.6931472, %v1123_v24 }
  0xe1   : > { %1136 = vpow2.f32 %v710_v2  ;;  %v1127_v49 = vpop.eup %1126  ;;  %v653_v46 = vadd.f32 1.0, %v1125_v36  ;;  %v656_v59 = vmul.f32 -0.5, %v1125_v36  ;;  %v611_v11 = vadd.f32 %v607_v53, %v547_v58 }
  0xe2   : > { %v662_v2 = vadd.f32 1.0, %v1127_v49  ;;  %1138 = vlog2.f32 %v1501_v40  ;;  %v665_v43 = vmul.f32 -0.5, %v1127_v49  ;;  %v659_v28 = vand.u32 2147483647, %v1125_v36 }
  0xe3   : > { %v1129_v25 = vpop.eup %1128  ;;  %1140 = vlog2.f32 %v653_v46  ;;  %v586_v58 = vmul.f32 %v1522_v50, %v585_v17  ;;  %vm1570_vm13 = vcmp.lt.f32.partialorder %v587_v60, 0.0004427343  ;;  %vm1579_vm14 = vcmp.lt.f32.partialorder %v650_v29, 0.0004427343 }
  0xe4   : > { %v1552_v4 = vpop.eup %1130  ;;  %v592_v27 = vmul.f32 0.6931472, %v1129_v25  ;;  %1142 = vlog2.f32 %v662_v2  ;;  %v657_v25 = vadd.f32 1.0, %v656_v59  ;;  %v612_v59 = vsel %vm548_vm7, %v1418_v45, %v608_v38 }
  0xe5   : > { %v1133_v1 = vpop.eup %1132  ;;  %v671_v20 = vadd.f32 1.0, %v1552_v4  ;;  %v674_v53 = vmul.f32 -0.5, %v1552_v4  ;;  %v649_v2 = vmul.f32 %v1510_v56, %v648_v57  ;;  %v615_v50 = vsel %vm551_vm8, %v1455_v47, %v611_v11 }
  0xe6   : > { %v1559_v42 = vpop.eup %1134  ;;  %v583_v40 = vmul.f32 0.6931472, %v1133_v1  ;;  %v598_v24 = vsel %vm1547_vm10, %v595_v6, %v592_v27  ;;  %v666_v60 = vadd.f32 1.0, %v665_v43  ;;  %v668_v27 = vand.u32 2147483647, %v1127_v49 }
  0xe7   : > { %v1562_v26 = vpop.eup %1136  ;;  %1144 = vlog2.f32 %v671_v20  ;;  %v610_v38 = vadd.f32 %v598_v24, %v546_v54  ;;  %v652_v56 = vsel %vm1579_vm14, %v649_v2, %v646_v8  ;;  %v658_v29 = vmul.f32 %v1125_v36, %v657_v25 }
  0xe8   : > { %v1139_v17 = vpop.eup %1138  ;;  %v589_v31 = vsel %vm1570_vm13, %v586_v58, %v583_v40  ;;  %vm1593_vm15 = vcmp.lt.f32.partialorder %v659_v28, 0.0004427343  ;;  %v675_v11 = vadd.f32 1.0, %v674_v53  ;;  %v677_v43 = vand.u32 2147483647, %v1552_v4 }
  0xe9   : > { %v1141_v6 = vpop.eup %1140  ;;  %v725_v58 = vadd.f32 1.0, %v1562_v26  ;;  %v609_v54 = vadd.f32 %v589_v31, %v545_v62  ;;  %v720_v36 = vadd.f32 1.0, %v1506_v52  ;;  %v734_v8 = vadd.f32 1.0, %v1559_v42 }
  0xea   : > { %v1143_v20 = vpop.eup %1142  ;;  %v655_v40 = vmul.f32 0.6931472, %v1141_v6  ;;  %v667_v28 = vmul.f32 %v1127_v49, %v666_v60  ;;  %vm1607_vm6 = vcmp.lt.f32.partialorder %v668_v27, 0.0004427343  ;;  %v680_v53 = vadd.f32 %v652_v56, %v616_v32 }
  0xeb   : > { %v664_v24 = vmul.f32 0.6931472, %v1143_v20  ;;  %v722_v2 = vand.u32 2147483647, %v1483_v14  ;;  %v614_v52 = vsel %vm550_vm11, %v1477_v10, %v610_v38  ;;  %v1618_v1 = vmul.f32 0.6931472, %v1139_v17 }
  0xec   : > { %v728_v31 = vmul.f32 -0.5, %v1562_v26  ;;  %vm623_vm7 = vcmp.ne.f32.partialorder %v1498_v33, %v1498_v33  ;;  %v661_v49 = vsel %vm1593_vm15, %v658_v29, %v655_v40  ;;  %v676_v60 = vmul.f32 %v1552_v4, %v675_v11 }
  0xed   : > { %v1145_v25 = vpop.eup %1144  ;;  %v670_v32 = vsel %vm1607_vm6, %v667_v28, %v664_v24  ;;  %1146 = vlog2.f32 %v725_v58  ;;  %v613_v17 = vsel %vm549_vm12, %v1480_v7, %v609_v54  ;;  %vm1632_vm8 = vcmp.lt.f32.partialorder %v677_v43, 0.0004427343 }
  0xee   : > { %v673_v62 = vmul.f32 0.6931472, %v1145_v25  ;;  %v1637_v6 = vmul.f32 %v1483_v14, %v720_v36  ;;  %1148 = vlog2.f32 %v734_v8  ;;  %vm1641_vm9 = vcmp.lt.f32.partialorder %v722_v2, 0.0004427343 }
  0xef   : > { %v731_v4 = vand.u32 2147483647, %v1562_v26  ;;  %v743_v29 = vadd.f32 1.0, %v1526_v5  ;;  %v681_v57 = vadd.f32 %v661_v49, %v617_v34  ;;  %v682_v20 = vadd.f32 %v670_v32, %v618_v0 }
  0xf0   : > { %v679_v38 = vsel %vm1632_vm8, %v676_v60, %v673_v62  ;;  %v729_v40 = vadd.f32 1.0, %v728_v31  ;;  %v740_v14 = vand.u32 2147483647, %v1559_v42  ;;  %v737_v11 = vmul.f32 -0.5, %v1559_v42 }
  0xf1   : > { %1150 = vlog2.f32 %v743_v29  ;;  %v746_v43 = vmul.f32 -0.5, %v1526_v5  ;;  %v1653_v58 = vsub.f32 %v1418_v45, %v612_v59  ;;  %vm622_vm10 = vcmp.ne.f32.partialorder %v1492_v22, %v1492_v22 }
  0xf2   : > { %v683_v54 = vadd.f32 %v679_v38, %v619_v63  ;;  %v1663_v0 = vsel %vm620_vm0, %v1439_v39, %v680_v53  ;;  %v724_v34 = vsel %vm1641_vm9, %v1637_v6, %v1618_v1  ;;  %vm1669_vm11 = vcmp.lt.f32.partialorder %v731_v4, 0.0004427343 }
  0xf3   : > { %v1147_v24 = vpop.eup %1146  ;;  %v1674_v59 = vsub.f32 %v1480_v7, %v613_v17  ;;  %v1677_v63 = vsub.f32 %v1477_v10, %v614_v52  ;;  %v1680_v36 = vsub.f32 %v1455_v47, %v615_v50  ;;  %v1686_v25 = vsel %vm621_vm5, %v1489_v21, %v681_v57 }
  0xf4   : > { %v1149_v8 = vpop.eup %1148  ;;  %v1689_v28 = vsel %vm622_vm10, %v1492_v22, %v682_v20  ;;  %v730_v46 = vmul.f32 %v1562_v26, %v729_v40  ;;  %vm1692_vm12 = vcmp.lt.f32.partialorder %v740_v14, 0.0004427343  ;;  %v738_v10 = vadd.f32 1.0, %v737_v11 }
  0xf5   : > { %v747_v53 = vadd.f32 1.0, %v746_v43  ;;  %v749_v47 = vand.u32 2147483647, %v1526_v5  ;;  %v768_v50 = vmul.f32 1.442695, %v1653_v58  ;;  %v1702_v2 = vsel %vm623_vm7, %v1498_v33, %v683_v54 }
  0xf6   : > { %v770_v52 = vmul.f32 1.442695, %v1674_v59  ;;  %v772_v26 = vmul.f32 1.442695, %v1677_v63  ;;  %v774_v62 = vmul.f32 1.442695, %v1680_v36  ;;  %v776_v32 = vsub.f32 %v1439_v39, %v1663_v0 }
  0xf7   : > { %v1151_v1 = vpop.eup %1150  ;;  %v727_v31 = vmul.f32 0.6931472, %v1147_v24  ;;  %v736_v49 = vmul.f32 0.6931472, %v1149_v8  ;;  %1152 = vpow2.f32 %v768_v50  ;;  %v777_v17 = vsub.f32 %v1489_v21, %v1686_v25 }
  0xf8   : > { %v745_v60 = vmul.f32 0.6931472, %v1151_v1  ;;  %1154 = vpow2.f32 %v770_v52  ;;  %v778_v27 = vsub.f32 %v1492_v22, %v1689_v28  ;;  %v739_v6 = vmul.f32 %v1559_v42, %v738_v10 }
  0xf9   : > { %1156 = vpow2.f32 %v772_v26  ;;  %v779_v38 = vsub.f32 %v1498_v33, %v1702_v2  ;;  %v780_v56 = vmul.f32 1.442695, %v776_v32  ;;  %v748_v4 = vmul.f32 %v1526_v5, %v747_v53 }
  0xfa   : > { %1158 = vpow2.f32 %v774_v62  ;;  %v782_v29 = vmul.f32 1.442695, %v777_v17  ;;  %v784_v39 = vmul.f32 1.442695, %v778_v27  ;;  %v733_v57 = vsel %vm1669_vm11, %v730_v46, %v727_v31 }
  0xfb   : > { %vm1719_vm13 = vcmp.lt.f32.partialorder %v749_v47, 0.0004427343  ;;  %1160 = vpow2.f32 %v780_v56  ;;  %v786_v22 = vmul.f32 1.442695, %v779_v38  ;;  %v689_v42 = vmax.f32 %v1474_v9, 0.0 }
  0xfc   : > { %v742_v33 = vsel %vm1692_vm12, %v739_v6, %v736_v49  ;;  %v751_v5 = vsel %vm1719_vm13, %v748_v4, %v745_v60  ;;  %1162 = vpow2.f32 %v782_v29  ;;  %v886_v40 = vadd.f32 %v885_v41, %v1485_v15 }
  0xfd   : > { %v1153_v20 = vpop.eup %1152  ;;  %v690_v14 = vmax.f32 %v1471_v3, 0.0  ;;  %v691_v11 = vmax.f32 %v1445_v30, 0.0  ;;  %1164 = vpow2.f32 %v784_v39  ;;  %v752_v54 = vadd.f32 %v724_v34, %v688_v19 }
  0xfe   : > { %v1155_v43 = vpop.eup %1154  ;;  %v753_v24 = vadd.f32 %v733_v57, %v689_v42  ;;  %1166 = vpow2.f32 %v786_v22  ;;  %vm692_vm14 = vcmp.ne.f32.partialorder %v1412_v35, %v1412_v35  ;;  %vm693_vm15 = vcmp.ne.f32.partialorder %v1474_v9, %v1474_v9 }
  0xff   : > { %v1157_v45 = vpop.eup %1156  ;;  %v754_v8 = vadd.f32 %v742_v33, %v690_v14  ;;  %v755_v46 = vadd.f32 %v751_v5, %v691_v11  ;;  %1168 = vlog2.f32 %v886_v40  ;;  %vm694_vm0 = vcmp.ne.f32.partialorder %v1471_v3, %v1471_v3 }
 0x100   : > { %v1159_v7 = vpop.eup %1158  ;;  %vm695_vm5 = vcmp.ne.f32.partialorder %v1445_v30, %v1445_v30  ;;  %v756_v19 = vsel %vm692_vm14, %v1412_v35, %v752_v54  ;;  %v757_v41 = vsel %vm693_vm15, %v1474_v9, %v753_v24  ;;  %v1845_v56 = vmax.f32 %v1374_v61, -7.0 }
 0x101   : > { %v1161_v10 = vpop.eup %1160  ;;  %v758_v47 = vsel %vm694_vm0, %v1471_v3, %v754_v8  ;;  %v759_v50 = vsel %vm695_vm5, %v1445_v30, %v755_v46  ;;  %v796_v49 = vmul.f32 2.0, %v756_v19  ;;  %v797_v32 = vmul.f32 2.0, %v757_v41 }
 0x102   : > { %v1163_v15 = vpop.eup %1162  ;;  %v788_v34 = vsub.f32 %v1153_v20, %v1161_v10  ;;  %v798_v17 = vmul.f32 2.0, %v758_v47  ;;  %v799_v27 = vmul.f32 2.0, %v759_v50  ;;  %v792_v4 = vsub.f32 %v1412_v35, %v1845_v56 }
 0x103   : > { %v1165_v53 = vpop.eup %1164  ;;  %v789_v52 = vsub.f32 %v1155_v43, %v1163_v15  ;;  %v1846_v29 = vmax.f32 %v1401_v23, -7.0  ;;  %vm806_vm6 = vcmp.lt.f32.partialorder %v1452_v44, -0.999  ;;  %v1847_v21 = vmax.f32 %v1391_v18, -7.0 }
 0x104   : > { %v1167_v26 = vpop.eup %1166  ;;  %v790_v62 = vsub.f32 %v1157_v45, %v1165_v53  ;;  %v816_v1 = vmax.f32 %v788_v34, 1e-12  ;;  %v1848_v42 = vmax.f32 %v1383_v12, -7.0  ;;  %vm810_vm7 = vcmp.gt.f32.partialorder %v1452_v44, 0.999 }
 0x105   : > { %v791_v31 = vsub.f32 %v1159_v7, %v1167_v26  ;;  %v817_v60 = vmax.f32 %v789_v52, 1e-12  ;;  %v1169_v38 = vpop.eup %1168  ;;  %v793_v39 = vsub.f32 %v1474_v9, %v1846_v29  ;;  %v794_v22 = vsub.f32 %v1471_v3, %v1847_v21 }
 0x106   : > { %v818_v6 = vmax.f32 %v790_v62, 1e-12  ;;  %1170 = vlog2.f32 %v816_v1  ;;  %v795_v33 = vsub.f32 %v1445_v30, %v1848_v42  ;;  %v800_v61 = vsub.f32 %v792_v4, %v796_v49 }
 0x107   : > { %v819_v57 = vmax.f32 %v791_v31, 1e-12  ;;  %1172 = vlog2.f32 %v817_v60  ;;  %v801_v35 = vsub.f32 %v793_v39, %v797_v32  ;;  %v888_v23 = vmul.f32 0.6931472, %v1169_v38 }
 0x108   : > { %1174 = vlog2.f32 %v818_v6  ;;  %v764_v9 = vsub.f32 0.0, %v1663_v0  ;;  %v802_v5 = vsub.f32 %v794_v22, %v798_v17  ;;  %v803_v20 = vsub.f32 %v795_v33, %v799_v27 }
 0x109   : > { %1176 = vlog2.f32 %v819_v57  ;;  %v765_v40 = vsub.f32 0.0, %v1686_v25  ;;  %v766_v18 = vsub.f32 0.0, %v1689_v28  ;;  %v767_v3 = vsub.f32 0.0, %v1702_v2 }
 0x10a   : > { %vm805_vm8 = vcmp.lt.f32.partialorder %v1462_v55, -0.999  ;;  %vm808_vm9 = vcmp.gt.f32.partialorder %v1386_v13, 0.999  ;;  %vm809_vm10 = vcmp.gt.f32.partialorder %v1462_v55, 0.999 }
 0x10b   : > { %vm811_vm11 = vcmp.gt.f32.partialorder %v1434_v37, 0.999  ;;  %v1031_v0 = vadd.f32 -4.8481164, %v800_v61  ;;  %v1032_v11 = vadd.f32 -4.8481164, %v801_v35 }
 0x10c   : > { %v1171_v12 = vpop.eup %1170  ;;  %v1033_v25 = vadd.f32 -4.8481164, %v802_v5  ;;  %v1034_v24 = vadd.f32 -4.8481164, %v803_v20  ;;  %vm812_vm12 = vcmp.gt.f32.partialorder %v788_v34, 1e-05 }
 0x10d   : > { %v1173_v30 = vpop.eup %1172  ;;  %v821_v14 = vmul.f32 0.6931472, %v1171_v12  ;;  %vm813_vm13 = vcmp.gt.f32.partialorder %v789_v52, 1e-05  ;;  %vm814_vm14 = vcmp.gt.f32.partialorder %v790_v62, 1e-05  ;;  %v889_v52 = vadd.f32 %v888_v23, %v1388_v16 }
 0x10e   : > { %v1175_v43 = vpop.eup %1174  ;;  %v823_v54 = vmul.f32 0.6931472, %v1173_v30  ;;  %vm807_vm15 = vcmp.lt.f32.partialorder %v1434_v37, -0.999  ;;  %vm815_vm0 = vcmp.gt.f32.partialorder %v791_v31, 1e-05 }
 0x10f   : > { %v1177_v28 = vpop.eup %1176  ;;  %v825_v2 = vmul.f32 0.6931472, %v1175_v43  ;;  %v832_v8 = vsel %vm812_vm12, %v821_v14, %v1031_v0  ;;  %vm804_vm5 = vcmp.lt.f32.partialorder %v1386_v13, -0.999  ;;  %v891_v37 = vsub.f32 %v1370_v51, %v889_v52 }
 0x110   : > { %v827_v45 = vmul.f32 0.6931472, %v1177_v28  ;;  %v833_v46 = vsel %vm813_vm13, %v823_v54, %v1032_v11  ;;  %v836_v34 = vsel %vm808_vm9, %v764_v9, %v832_v8 }
 0x111   : > { %v834_v7 = vsel %vm814_vm14, %v825_v2, %v1033_v25  ;;  %v837_v10 = vsel %vm809_vm10, %v765_v40, %v833_v46  ;;  %v840_v55 = vsel %vm804_vm5, %v1653_v58, %v836_v34 }
 0x112   : > { %v835_v15 = vsel %vm815_vm0, %v827_v45, %v1034_v24  ;;  %v838_v19 = vsel %vm810_vm7, %v766_v18, %v834_v7  ;;  %v841_v41 = vsel %vm805_vm8, %v1674_v59, %v837_v10 }
 0x113   : > { %v839_v53 = vsel %vm811_vm11, %v767_v3, %v835_v15  ;;  %v842_v47 = vsel %vm806_vm6, %v1677_v63, %v838_v19  ;;  %v846_v50 = vrot.slane %v841_v41, 2  ;;  %v890_v63 = vsub.f32 %v1366_v48, %v889_v52 }
 0x114   : > { %v843_v26 = vsel %vm807_vm15, %v1680_v36, %v839_v53  ;;  %v847_v62 = vrot.slane %v842_v47, 2  ;;  %v854_v1 = vrot.slane %v842_v47, 4  ;;  %v1209_v48 = vmov 0.0  }
 0x115   : > { %v855_v31 = vrot.slane %v843_v26, 4 }
 0x116   : > { %v848_v59 = vsel %vm453_vm3, %v846_v50, %v847_v62  ;;  %v852_v13 = vadd.f32 %v847_v62, %v841_v41  ;;  %vm928_vm3 = vcmask 0  }
 0x117   : > { %v851_v49 = vadd.f32 %v848_v59, %v840_v55  ;;  %v856_v32 = vsel %vm477_vm4, %v854_v1, %v855_v31  ;;  %929 = vst.msk [vmem:[%s244_s12] sm:$0x1] %vm928_vm3, %v1209_v48 }
 0x118   : > { %v860_v44 = vadd.f32 %v855_v31, %v852_v13 }
 0x119   : > { %v859_v60 = vadd.f32 %v856_v32, %v851_v49 }
 0x11a   : > { %v893_v16 = vadd.f32 %v891_v37, %v860_v44 }
 0x11b   : > { %v892_v17 = vadd.f32 %v890_v63, %v859_v60 }
 0x11c   : > { %v895_v58 = vsel %vm863_vm2, %v893_v16, -inf }
 0x11d   : > { %v894_v36 = vsel %vm861_vm1, %v892_v17, -inf }
 0x11e   : > { %v896_v27 = vmax.f32 %v894_v36, %v895_v58  ;;  %v930_v11 = vld [vmem:[%s244_s12] sm:$0x1] }
 0x120   : > { %v897_v6 = vrot.slane %v896_v27, 4 }
 0x122   : > { %v898_v38 = vmax.f32 %v896_v27, %v897_v6 }
 0x124   : > { %v899_v56 = vrot.slane %v898_v38, 2 }
 0x126   : > { %v900_v4 = vmax.f32 %v898_v38, %v899_v56 }
 0x128   : > { %v901_v29 = vrot.slane %v900_v4, 1 }
 0x12a   : > { %v902_v51 = vmax.f32 %v900_v4, %v901_v29 }
 0x12c   : > { %v903_v39 = vsub.f32 %v892_v17, %v902_v51  ;;  %v904_v57 = vsub.f32 %v893_v16, %v902_v51 }
 0x12e   : > { %v905_v21 = vmul.f32 1.442695, %v903_v39  ;;  %v907_v22 = vmul.f32 1.442695, %v904_v57 }
 0x130   : > { %1178 = vpow2.f32 %v905_v21 }
 0x131   : > { %1180 = vpow2.f32 %v907_v22 }
 0x136   : > { %v1179_v42 = vpop.eup %1178 }
 0x137   : > { %v1181_v33 = vpop.eup %1180  ;;  %v909_v61 = vsel %vm861_vm1, %v1179_v42, 0.0 }
 0x138   : > { %v910_v35 = vsel %vm863_vm2, %v1181_v33, 0.0 }
 0x139   : > { %v911_v23 = vadd.f32 %v910_v35, %v909_v61 }
 0x13b   : > { %v912_v9 = vrot.slane %v911_v23, 4 }
 0x13d   : > { %v913_v5 = vadd.f32 %v912_v9, %v911_v23 }
 0x13f   : > { %v914_v20 = vrot.slane %v913_v5, 2 }
 0x141   : > { %v915_v40 = vadd.f32 %v914_v20, %v913_v5 }
 0x143   : > { %v916_v18 = vrot.slane %v915_v40, 1 }
 0x145   : > { %v917_v3 = vadd.f32 %v916_v18, %v915_v40 }
 0x147   : > { %1182 = vlog2.f32 %v917_v3 }
 0x14d   : > { %v1183_v12 = vpop.eup %1182 }
 0x14e   : > { %v919_v30 = vmul.f32 0.6931472, %v1183_v12 }
 0x150   : > { %v920_v14 = vadd.f32 %v919_v30, %v902_v51 }
 0x152   : > { %v921_v0 = vsel %vm861_vm1, %v920_v14, 0.0 }
 0x153   : > { %922 = vadd.xlane.f32.xlu1 %v921_v0 }
 0x1c6   : > { %v923_v43 = vpop.xlane.xlu1 %922 }
 0x1c7   : > { %v931_v54 = vadd.f32 %v930_v11, %v923_v43 }
 0x1c9   : > { %933 = vst.msk [vmem:[%s244_s12] sm:$0x1] %vm928_vm3, %v931_v54 }
 0x1ca PF: > { %s14_s17 = sadd.s32 1, %s1206_s17   ;;  %s1849_s15 = smov %s1202_s16 }
 0x1cb   : > { %p11_p5 = scmp.ge.s32.totalorder %s14_s17, 4   ;;  %s1850_s16 = smov %s1852_s18 }
 0x1cd   :  { %13 = sbr.rel (!%p11_p5) target bundleno = 2 (0x2), region = 73 }

</bundles_post_ra>
